<compile_context>
chip_gen: v7x
topology: tpu7x:2x2x1
jax: 0.10.0
libtpu: 0.0.40
codegen_flags: <defaults>
</compile_context>

<pallas_src>
from typing import NamedTuple, Tuple

import jax
import jax.numpy as jnp
from jax.experimental import pallas as pl
from jax.experimental.pallas import tpu as pltpu


_LANE = 128      # lane width (last-dim alignment for lane-dense stores / MXU N & K)
_SUBLANE = 16    # sublane packing granularity for the batch (M) axis


def _round_up(n, m):
    return ((n + m - 1) // m) * m


def _vmem_capacity_bytes():
    """Per-core VMEM capacity (v5e/v6e: 128 MiB, v7x: 64 MiB); safe fallback if unknown."""
    try:
        return int(pltpu.get_tpu_info().vmem_capacity_bytes)
    except Exception:
        return 128 * 1024 * 1024


def _pick_batch_tile(batch, d_in_pad, out_pad_dim, resident_bytes, vmem_cap):
    """Rows per grid step.

    Small/medium batches -> a single grid step (grid is a serial loop on 1-TC chips and
    the ~0.35 us/step overhead dwarfs these tiny matmuls). Large batches -> 256-multiple
    tiles so the 256-deep MXU (v6e/v7x) is full and v7x megacore gets a multi-step
    "parallel" grid, falling back to smaller tiles when VMEM-tight.
    """
    budget = vmem_cap // 2  # headroom for intermediates / compiler internal scratch

    def working_set(tb):
        # double-buffered streamed x/out tiles + single-buffered resident weights
        return 2 * tb * (d_in_pad * 4 + out_pad_dim * 4) + resident_bytes

    b16 = _round_up(max(batch, _SUBLANE), _SUBLANE)
    if batch < 512 and working_set(b16) <= budget:
        return b16
    for tb in (512, 256, 128, 64, 32, _SUBLANE):
        if working_set(tb) <= budget:
            return tb
    return _SUBLANE


class PreparedParams(NamedTuple):
    flat: Tuple[jax.Array, ...]   # (W1_p, b1_p, W2_p, b2_p, ..., Wn_p, bn_p)
    d_in_pad: int
    out_dim: int
    out_pad_dim: int
    n_layers: int


def prepare_params(params):
    """One-time weight prep (call once, reuse across forwards).

    Pads every layer's output width -- and the first layer's input width -- up to a
    multiple of 128 with zeros (mathematically exact: zero columns -> zero pre-activation
    -> ReLU(0)=0 -> zero rows feeding the next padded weight), and casts weights to bf16
    (MXU path) while keeping biases in f32.
    """
    d_in = params[0][0].shape[0]
    d_in_pad = _round_up(d_in, _LANE)
    out_dim = params[-1][0].shape[1]

    flat = []
    prev_pad = d_in_pad
    for (w, b) in params:
        in_k, out_k = w.shape
        out_pad = _round_up(out_k, _LANE)
        w_p = jnp.zeros((prev_pad, out_pad), jnp.bfloat16)
        w_p = w_p.at[:in_k, :out_k].set(w.astype(jnp.bfloat16))
        b_p = jnp.zeros((1, out_pad), jnp.float32)
        b_p = b_p.at[:, :out_k].set(b.astype(jnp.float32))
        flat.extend([w_p, b_p])
        prev_pad = out_pad

    flat = tuple(jax.block_until_ready(a) for a in flat)   # materialize once, off hot path
    return PreparedParams(flat=flat, d_in_pad=d_in_pad, out_dim=out_dim,
                          out_pad_dim=prev_pad, n_layers=len(params))


def _make_mlp_kernel(n_layers):
    """Fused n_layers-deep MLP forward for one batch tile (all operands in VMEM)."""

    def kernel(*refs):
        x_ref = refs[0]
        o_ref = refs[-1]
        wb = refs[1:-1]                          # (w1, b1, w2, b2, ..., wn, bn)
        h = x_ref[...].astype(jnp.bfloat16)      # f32 in HBM -> bf16 cast on the VPU
        for k in range(n_layers):
            w_ref, b_ref = wb[2 * k], wb[2 * k + 1]
            # bf16 x bf16 -> f32 accumulation on the MXU, bias add in f32.
            acc = jnp.dot(h, w_ref[...], preferred_element_type=jnp.float32) + b_ref[...]
            if k + 1 < n_layers:
                h = jnp.maximum(acc, 0.0).astype(jnp.bfloat16)   # ReLU (Dropout == id, eval)
            else:
                o_ref[...] = acc.astype(o_ref.dtype)             # lane-dense (128-padded) store

    return kernel


def property_predictor_forward(x, prep: PreparedParams, *, batch_tile=None,
                               out_dtype=jnp.float32):
    """Fused MLP forward.

    x:    [B, embedding_dim] float32
    prep: PreparedParams from prepare_params()
    Returns [B, output_dim] float32.
    """
    B, d_in = x.shape
    d_in_pad = prep.d_in_pad
    out_pad_dim = prep.out_pad_dim
    n_layers = prep.n_layers
    out_itemsize = jnp.dtype(out_dtype).itemsize

    if d_in != d_in_pad:                                   # ragged embedding_dim only
        x = jnp.pad(x, ((0, 0), (0, d_in_pad - d_in)))

    resident_bytes = sum(a.size * a.dtype.itemsize for a in prep.flat)
    vmem_cap = _vmem_capacity_bytes()

    # ---- batch tiling -------------------------------------------------------------------
    tb = _pick_batch_tile(B, d_in_pad, out_pad_dim, resident_bytes, vmem_cap) \
        if batch_tile is None else batch_tile
    B_pad = _round_up(max(B, tb), tb)
    grid = B_pad // tb
    if B_pad != B:
        x = jnp.pad(x, ((0, B_pad - B), (0, 0)))

    # ---- cost estimate + VMEM budget ----------------------------------------------------
    flops = 0
    bytes_accessed = B_pad * d_in_pad * 4 + B_pad * out_pad_dim * out_itemsize
    max_width = d_in_pad
    for k in range(n_layers):
        w_p, b_p = prep.flat[2 * k], prep.flat[2 * k + 1]
        flops += 2 * B_pad * w_p.shape[0] * w_p.shape[1]
        bytes_accessed += w_p.size * 2 + b_p.size * 4
        max_width = max(max_width, w_p.shape[1])
    cost = pl.CostEstimate(flops=int(flops), transcendentals=0,
                           bytes_accessed=int(bytes_accessed))

    # Streamed x/out tiles are double-buffered; resident weights single-buffered
    # (Buffered(1)); add rough headroom for the f32 accumulator + bf16 activations.
    vmem_need = 2 * tb * (d_in_pad * 4 + out_pad_dim * out_itemsize)
    vmem_need += resident_bytes
    vmem_need += tb * max_width * 8
    vmem_limit = int(min(max(2 * vmem_need, 16 * 1024 * 1024), int(vmem_cap * 0.6)))

    # ---- block specs ----------------------------------------------------------------------
    in_specs = [pl.BlockSpec((tb, d_in_pad), lambda i: (i, 0))]   # x tile, streamed
    flat_args = [x]
    for a in prep.flat:
        # Constant index map + single buffer -> stays resident in VMEM across all steps.
        in_specs.append(pl.BlockSpec(a.shape, lambda i: (0, 0),
                                     pipeline_mode=pl.Buffered(1)))
        flat_args.append(a)

    out = pl.pallas_call(
        _make_mlp_kernel(n_layers),
        out_shape=jax.ShapeDtypeStruct((B_pad, out_pad_dim), out_dtype),
        grid_spec=pltpu.PrefetchScalarGridSpec(
            num_scalar_prefetch=0,
            grid=(grid,),
            in_specs=in_specs,
            out_specs=pl.BlockSpec((tb, out_pad_dim), lambda i: (i, 0)),
        ),
        compiler_params=pltpu.CompilerParams(
            dimension_semantics=("parallel",),
            vmem_limit_bytes=vmem_limit),
        cost_estimate=cost,
    )(*flat_args)

    return out[:B, :prep.out_dim].astype(jnp.float32)


def init_params(key, embedding_dim, hidden_dims, output_dim):
    """Deterministic synthetic parameters (PyTorch nn.Linear-like uniform init)."""
    dims = [embedding_dim] + list(hidden_dims) + [output_dim]
    params = []
    for i in range(len(dims) - 1):
        fan_in, fan_out = dims[i], dims[i + 1]
        key, kw, kb = jax.random.split(key, 3)
        bound = 1.0 / (fan_in ** 0.5)
        w_t = jax.random.uniform(kw, (fan_in, fan_out), jnp.float32, -bound, bound)
        b = jax.random.uniform(kb, (1, fan_out), jnp.float32, -bound, bound)
        params.append((w_t, b))
    return params


def reference_forward(x, params):
    """f32 reference matching the kernel's math (bf16 matmul inputs, f32 accumulation)."""
    h = x.astype(jnp.bfloat16).astype(jnp.float32)
    for i, (w, b) in enumerate(params):
        w32 = w.astype(jnp.bfloat16).astype(jnp.float32)
        h = h @ w32 + b
        if i < len(params) - 1:
            h = jnp.maximum(h, 0.0)
            h = h.astype(jnp.bfloat16).astype(jnp.float32)
    return h


if __name__ == "__main__":
    # Small shapes consistent with the module's forward: x is [batch, embedding_dim].
    batch = 256
    embedding_dim = 128
    hidden_dims = [128, 64, 32]
    output_dim = 1

    key = jax.random.PRNGKey(0)
    key, kx = jax.random.split(key)
    x = jax.random.normal(kx, (batch, embedding_dim), jnp.float32)
    params = init_params(key, embedding_dim, hidden_dims, output_dim)

    prep = prepare_params(params)                  # one-time: pad + bf16 cast, off hot path
    out = property_predictor_forward(x, prep)      # B=256 -> single 256-row grid step
    out = jax.block_until_ready(out)

    ref = reference_forward(x, params)
    assert out.shape == (batch, output_dim), out.shape
    assert jnp.allclose(out, ref, atol=1e-2, rtol=1e-2), float(jnp.max(jnp.abs(out - ref)))

    print("KERNEL_OK")
</pallas_src>

<mosaic_0001>
module attributes {stable_mosaic.version = 11 : i64} {
  func.func @kernel(%arg0: i32, %arg1: memref<256x128xf32, #tpu.memory_space<vmem>>, %arg2: memref<128x128xbf16, #tpu.memory_space<vmem>>, %arg3: memref<1x128xf32, #tpu.memory_space<vmem>>, %arg4: memref<128x128xbf16, #tpu.memory_space<vmem>>, %arg5: memref<1x128xf32, #tpu.memory_space<vmem>>, %arg6: memref<128x128xbf16, #tpu.memory_space<vmem>>, %arg7: memref<1x128xf32, #tpu.memory_space<vmem>>, %arg8: memref<128x128xbf16, #tpu.memory_space<vmem>>, %arg9: memref<1x128xf32, #tpu.memory_space<vmem>>, %arg10: memref<256x128xf32, #tpu.memory_space<vmem>>) attributes {dimension_semantics = [#tpu.dimension_semantics<parallel>], iteration_bounds = array<i64: 1>, scalar_prefetch = 0 : i64, scratch_operands = 0 : i64, tpu.core_type = #tpu.core_type<tc>, window_params = [{transform_indices = @transform_0, window_bounds = array<i64: 256, 128>}, {pipeline_mode = #tpu.pipeline_mode<synchronous>, transform_indices = @transform_1, window_bounds = array<i64: 128, 128>}, {pipeline_mode = #tpu.pipeline_mode<synchronous>, transform_indices = @transform_2, window_bounds = array<i64: 1, 128>}, {pipeline_mode = #tpu.pipeline_mode<synchronous>, transform_indices = @transform_3, window_bounds = array<i64: 128, 128>}, {pipeline_mode = #tpu.pipeline_mode<synchronous>, transform_indices = @transform_4, window_bounds = array<i64: 1, 128>}, {pipeline_mode = #tpu.pipeline_mode<synchronous>, transform_indices = @transform_5, window_bounds = array<i64: 128, 128>}, {pipeline_mode = #tpu.pipeline_mode<synchronous>, transform_indices = @transform_6, window_bounds = array<i64: 1, 128>}, {pipeline_mode = #tpu.pipeline_mode<synchronous>, transform_indices = @transform_7, window_bounds = array<i64: 128, 128>}, {pipeline_mode = #tpu.pipeline_mode<synchronous>, transform_indices = @transform_8, window_bounds = array<i64: 1, 128>}, {transform_indices = @transform_9, window_bounds = array<i64: 256, 128>}]} {
    %c0 = arith.constant 0 : index
    %c0_0 = arith.constant 0 : index
    %0 = vector.load %arg1[%c0, %c0_0] : memref<256x128xf32, #tpu.memory_space<vmem>>, vector<256x128xf32>
    %1 = arith.truncf %0 : vector<256x128xf32> to vector<256x128xbf16>
    %c0_1 = arith.constant 0 : index
    %c0_2 = arith.constant 0 : index
    %2 = vector.load %arg2[%c0_1, %c0_2] : memref<128x128xbf16, #tpu.memory_space<vmem>>, vector<128x128xbf16>
    %cst = arith.constant dense<0.000000e+00> : vector<256x128xf32>
    %3 = tpu.matmul %1, %2, %cst {dimension_numbers = #tpu.dot_dimension_numbers<[1], [0], [0], [1], [0, 0, 1, 1], [], []>} : vector<256x128xbf16>, vector<128x128xbf16>, vector<256x128xf32> -> vector<256x128xf32>
    %c0_3 = arith.constant 0 : index
    %c0_4 = arith.constant 0 : index
    %4 = vector.load %arg3[%c0_3, %c0_4] : memref<1x128xf32, #tpu.memory_space<vmem>>, vector<1x128xf32>
    %5 = vector.broadcast %4 : vector<1x128xf32> to vector<256x128xf32>
    %6 = arith.addf %3, %5 : vector<256x128xf32>
    %cst_5 = arith.constant 0.000000e+00 : f32
    %7 = vector.broadcast %cst_5 : f32 to vector<256x128xf32>
    %8 = arith.maximumf %6, %7 : vector<256x128xf32>
    %9 = arith.truncf %8 : vector<256x128xf32> to vector<256x128xbf16>
    %c0_6 = arith.constant 0 : index
    %c0_7 = arith.constant 0 : index
    %10 = vector.load %arg4[%c0_6, %c0_7] : memref<128x128xbf16, #tpu.memory_space<vmem>>, vector<128x128xbf16>
    %cst_8 = arith.constant dense<0.000000e+00> : vector<256x128xf32>
    %11 = tpu.matmul %9, %10, %cst_8 {dimension_numbers = #tpu.dot_dimension_numbers<[1], [0], [0], [1], [0, 0, 1, 1], [], []>} : vector<256x128xbf16>, vector<128x128xbf16>, vector<256x128xf32> -> vector<256x128xf32>
    %c0_9 = arith.constant 0 : index
    %c0_10 = arith.constant 0 : index
    %12 = vector.load %arg5[%c0_9, %c0_10] : memref<1x128xf32, #tpu.memory_space<vmem>>, vector<1x128xf32>
    %13 = vector.broadcast %12 : vector<1x128xf32> to vector<256x128xf32>
    %14 = arith.addf %11, %13 : vector<256x128xf32>
    %cst_11 = arith.constant 0.000000e+00 : f32
    %15 = vector.broadcast %cst_11 : f32 to vector<256x128xf32>
    %16 = arith.maximumf %14, %15 : vector<256x128xf32>
    %17 = arith.truncf %16 : vector<256x128xf32> to vector<256x128xbf16>
    %c0_12 = arith.constant 0 : index
    %c0_13 = arith.constant 0 : index
    %18 = vector.load %arg6[%c0_12, %c0_13] : memref<128x128xbf16, #tpu.memory_space<vmem>>, vector<128x128xbf16>
    %cst_14 = arith.constant dense<0.000000e+00> : vector<256x128xf32>
    %19 = tpu.matmul %17, %18, %cst_14 {dimension_numbers = #tpu.dot_dimension_numbers<[1], [0], [0], [1], [0, 0, 1, 1], [], []>} : vector<256x128xbf16>, vector<128x128xbf16>, vector<256x128xf32> -> vector<256x128xf32>
    %c0_15 = arith.constant 0 : index
    %c0_16 = arith.constant 0 : index
    %20 = vector.load %arg7[%c0_15, %c0_16] : memref<1x128xf32, #tpu.memory_space<vmem>>, vector<1x128xf32>
    %21 = vector.broadcast %20 : vector<1x128xf32> to vector<256x128xf32>
    %22 = arith.addf %19, %21 : vector<256x128xf32>
    %cst_17 = arith.constant 0.000000e+00 : f32
    %23 = vector.broadcast %cst_17 : f32 to vector<256x128xf32>
    %24 = arith.maximumf %22, %23 : vector<256x128xf32>
    %25 = arith.truncf %24 : vector<256x128xf32> to vector<256x128xbf16>
    %c0_18 = arith.constant 0 : index
    %c0_19 = arith.constant 0 : index
    %26 = vector.load %arg8[%c0_18, %c0_19] : memref<128x128xbf16, #tpu.memory_space<vmem>>, vector<128x128xbf16>
    %cst_20 = arith.constant dense<0.000000e+00> : vector<256x128xf32>
    %27 = tpu.matmul %25, %26, %cst_20 {dimension_numbers = #tpu.dot_dimension_numbers<[1], [0], [0], [1], [0, 0, 1, 1], [], []>} : vector<256x128xbf16>, vector<128x128xbf16>, vector<256x128xf32> -> vector<256x128xf32>
    %c0_21 = arith.constant 0 : index
    %c0_22 = arith.constant 0 : index
    %28 = vector.load %arg9[%c0_21, %c0_22] : memref<1x128xf32, #tpu.memory_space<vmem>>, vector<1x128xf32>
    %29 = vector.broadcast %28 : vector<1x128xf32> to vector<256x128xf32>
    %30 = arith.addf %27, %29 : vector<256x128xf32>
    %c0_23 = arith.constant 0 : index
    %c0_24 = arith.constant 0 : index
    %31 = vector.load %arg10[%c0_23, %c0_24] : memref<256x128xf32, #tpu.memory_space<vmem>>, vector<256x128xf32>
    tpu.vector_store %arg10[%c0_23, %c0_24], %30 {strides = array<i32>} : memref<256x128xf32, #tpu.memory_space<vmem>>, vector<256x128xf32>,
    return
  }
  func.func @transform_0(%arg0: i32) -> (i32, i32) {
    %c0_i32 = arith.constant 0 : i32
    %c0_i32_0 = arith.constant 0 : i32
    return %arg0, %c0_i32 : i32, i32
  }
  func.func @transform_1(%arg0: i32) -> (i32, i32) {
    %c0_i32 = arith.constant 0 : i32
    %c0_i32_0 = arith.constant 0 : i32
    %c0_i32_1 = arith.constant 0 : i32
    return %c0_i32, %c0_i32_0 : i32, i32
  }
  func.func @transform_2(%arg0: i32) -> (i32, i32) {
    %c0_i32 = arith.constant 0 : i32
    %c0_i32_0 = arith.constant 0 : i32
    %c0_i32_1 = arith.constant 0 : i32
    return %c0_i32, %c0_i32_0 : i32, i32
  }
  func.func @transform_3(%arg0: i32) -> (i32, i32) {
    %c0_i32 = arith.constant 0 : i32
    %c0_i32_0 = arith.constant 0 : i32
    %c0_i32_1 = arith.constant 0 : i32
    return %c0_i32, %c0_i32_0 : i32, i32
  }
  func.func @transform_4(%arg0: i32) -> (i32, i32) {
    %c0_i32 = arith.constant 0 : i32
    %c0_i32_0 = arith.constant 0 : i32
    %c0_i32_1 = arith.constant 0 : i32
    return %c0_i32, %c0_i32_0 : i32, i32
  }
  func.func @transform_5(%arg0: i32) -> (i32, i32) {
    %c0_i32 = arith.constant 0 : i32
    %c0_i32_0 = arith.constant 0 : i32
    %c0_i32_1 = arith.constant 0 : i32
    return %c0_i32, %c0_i32_0 : i32, i32
  }
  func.func @transform_6(%arg0: i32) -> (i32, i32) {
    %c0_i32 = arith.constant 0 : i32
    %c0_i32_0 = arith.constant 0 : i32
    %c0_i32_1 = arith.constant 0 : i32
    return %c0_i32, %c0_i32_0 : i32, i32
  }
  func.func @transform_7(%arg0: i32) -> (i32, i32) {
    %c0_i32 = arith.constant 0 : i32
    %c0_i32_0 = arith.constant 0 : i32
    %c0_i32_1 = arith.constant 0 : i32
    return %c0_i32, %c0_i32_0 : i32, i32
  }
  func.func @transform_8(%arg0: i32) -> (i32, i32) {
    %c0_i32 = arith.constant 0 : i32
    %c0_i32_0 = arith.constant 0 : i32
    %c0_i32_1 = arith.constant 0 : i32
    return %c0_i32, %c0_i32_0 : i32, i32
  }
  func.func @transform_9(%arg0: i32) -> (i32, i32) {
    %c0_i32 = arith.constant 0 : i32
    %c0_i32_0 = arith.constant 0 : i32
    return %arg0, %c0_i32 : i32, i32
  }
}

</mosaic_0001>

<bundles_post_ra>
// kernel: tpu_custom_call.1
= control target key start
LH: loop header
LB: loop body
LE: loop exit
PB: predicated region body
PF: predicated region fallthrough
CT: control target
= control target key end

     0   :  { %14 = vsyncpa [#allocation3], 0  ;;  %s2077_s0 = inlined_call_operand.hbm [shape: f32[256,128], index: 0, kind: input, shape index: {}]   ;;  %s2078_s1 = inlined_call_operand.hbm [shape: bf16[128,128], index: 1, kind: input, shape index: {}]   ;;  %s2079_s2 = inlined_call_operand.vmem [shape: f32[1,128], index: 2, kind: input, shape index: {}]   ;;  %s2080_s3 = inlined_call_operand.hbm [shape: bf16[128,128], index: 3, kind: input, shape index: {}]   ;;  %s2081_s4 = inlined_call_operand.vmem [shape: f32[1,128], index: 4, kind: input, shape index: {}]   ;;  %s2082_s5 = inlined_call_operand.hbm [shape: bf16[128,128], index: 5, kind: input, shape index: {}]   ;;  %s2083_s6 = inlined_call_operand.vmem [shape: f32[1,128], index: 6, kind: input, shape index: {}]   ;;  %s2084_s7 = inlined_call_operand.hbm [shape: bf16[128,128], index: 7, kind: input, shape index: {}]   ;;  %s2085_s8 = inlined_call_operand.vmem [shape: f32[1,128], index: 8, kind: input, shape index: {}]   ;;  %s2086_s9 = inlined_call_operand.hbm [shape: f32[256,128], index: 9, kind: output, shape index: {}]  }
   0x1   :  { %15 = vsyncpa [#allocation6], 0 }
   0x2   :  { %16 = vsyncpa [#allocation9], 0 }
   0x3   :  { %17 = vsyncpa [#allocation4], 0  ;;  %s1779_s30 = smov [#allocation5]   ;;  %s1639_s13 = scalar_lea.hbm %s2078_s1, 1024 }
   0x4   :  { %s35_s10 = sshll.u32 %s1779_s30, 4  ;;  %p1640_p0 = scmp.ne.s32.totalorder %s2078_s1, %s1639_s13  ;;  %s36_s10 = int_to_ptr.vmem [resolvable:$true] %s35_s10 }
   0x5   :  { %p1643_p1 = scmp.lt.u32.totalorder %s1639_s13, %s2078_s1 }
   0x7   :  { %p1645_p2 = pnand %p1643_p1, %p1640_p0 }
   0x9   :  { %1648 = shalt.err (!%p1645_p2)
}
   0xa   :  { %s1649_s18 = scalar_lea.vmem %s36_s10, 1024  ;;  %p1654_p4 = scmp.lt.s32.totalorder %s36_s10, %s36_s10 }
   0xb   :  { %p1650_p3 = scmp.ne.s32.totalorder %s36_s10, %s1649_s18  ;;  %p1655_p5 = scmp.lt.s32.totalorder %s1649_s18, %s1649_s18 }
   0xd   :  { %p1656_p6 = por %p1655_p5, %p1654_p4 }
   0xf   :  { %p1657_p7 = pnand %p1656_p6, %p1650_p3 }
  0x11   :  { %1660 = shalt.err (!%p1657_p7)
}
  0x12   :  { %s1780_s19 = smov 64   ;;  %s1781_s20 = smov 4  }
  0x13   :  { %41 = dma.hbm_to_vmem [thread:$0]  %s2078_s1, 1024, %s36_s10, [#allocation6], %s1780_s19, %s1780_s19, %s1781_s20  }
  0x14   :  { %s1782_s23 = smov [#allocation8]   ;;  %s1783_s25 = smov [#allocation2]  }
  0x15   :  { %s63_s24 = sshll.u32 %s1782_s23, 4  ;;  %s23_s26 = sshll.u32 %s1783_s25, 4  ;;  %s64_s24 = int_to_ptr.vmem [resolvable:$true] %s63_s24  ;;  %s24_s26 = int_to_ptr.vmem [resolvable:$true] %s23_s26 }
  0x16   :  { %s1661_s29 = scalar_lea.hbm %s2082_s5, 1024 }
  0x17   :  { %p1662_p8 = scmp.ne.s32.totalorder %s2082_s5, %s1661_s29  ;;  %p1665_p9 = scmp.lt.u32.totalorder %s1661_s29, %s2082_s5 }
  0x19   :  { %p1667_p10 = pnand %p1665_p9, %p1662_p8 }
  0x1b   :  { %1670 = shalt.err (!%p1667_p10)
}
  0x1c   :  { %s1671_s1 = scalar_lea.vmem %s64_s24, 1024  ;;  %p1676_p12 = scmp.lt.s32.totalorder %s64_s24, %s64_s24 }
  0x1d   :  { %p1672_p11 = scmp.ne.s32.totalorder %s64_s24, %s1671_s1  ;;  %p1677_p13 = scmp.lt.s32.totalorder %s1671_s1, %s1671_s1 }
  0x1f   :  { %p1678_p0 = por %p1677_p13, %p1676_p12 }
  0x21   :  { %p1679_p1 = pnand %p1678_p0, %p1672_p11 }
  0x23   :  { %1682 = shalt.err (!%p1679_p1)
}
  0x24   :  { %69 = dma.hbm_to_vmem [thread:$0]  %s2082_s5, 1024, %s64_s24, [#allocation9], %s1780_s19, %s1780_s19, %s1781_s20  }
  0x25   :  { %s1683_s17 = scalar_lea.hbm %s2077_s0, 4096 }
  0x26   :  { %p1684_p2 = scmp.ne.s32.totalorder %s2077_s0, %s1683_s17  ;;  %p1687_p3 = scmp.lt.u32.totalorder %s1683_s17, %s2077_s0 }
  0x28   :  { %p1689_p4 = pnand %p1687_p3, %p1684_p2 }
  0x2a   :  { %1692 = shalt.err (!%p1689_p4)
}
  0x2b   :  { %s1693_s25 = scalar_lea.vmem %s24_s26, 4096  ;;  %p1698_p6 = scmp.lt.s32.totalorder %s24_s26, %s24_s26 }
  0x2c   :  { %p1694_p5 = scmp.ne.s32.totalorder %s24_s26, %s1693_s25  ;;  %p1699_p7 = scmp.lt.s32.totalorder %s1693_s25, %s1693_s25 }
  0x2e   :  { %p1700_p8 = por %p1699_p7, %p1698_p6 }
  0x30   :  { %p1701_p9 = pnand %p1700_p8, %p1694_p5 }
  0x32   :  { %1704 = shalt.err (!%p1701_p9)
}
  0x33   :  { %s1784_s5 = smov 128   ;;  %s1785_s24 = smov 8  }
  0x34   :  { %29 = dma.hbm_to_vmem [thread:$0]  %s2077_s0, 4096, %s24_s26, [#allocation3], %s1784_s5, %s1784_s5, %s1785_s24  }
  0x35   :  { %s1786_s29 = smov [#allocation7]   ;;  %s1787_s11 = smov [#allocation10]  }
  0x36   :  { %s49_s30 = sshll.u32 %s1786_s29, 4  ;;  %s77_s12 = sshll.u32 %s1787_s11, 4  ;;  %s50_s30 = int_to_ptr.vmem [resolvable:$true] %s49_s30  ;;  %s78_s12 = int_to_ptr.vmem [resolvable:$true] %s77_s12 }
  0x37   :  { %s1705_s10 = scalar_lea.hbm %s2080_s3, 1024 }
  0x38   :  { %p1706_p10 = scmp.ne.s32.totalorder %s2080_s3, %s1705_s10  ;;  %p1709_p11 = scmp.lt.u32.totalorder %s1705_s10, %s2080_s3 }
  0x3a   :  { %p1711_p12 = pnand %p1709_p11, %p1706_p10 }
  0x3c   :  { %1714 = shalt.err (!%p1711_p12)
}
  0x3d   :  { %s1715_s0 = scalar_lea.vmem %s50_s30, 1024  ;;  %p1720_p0 = scmp.lt.s32.totalorder %s50_s30, %s50_s30 }
  0x3e   :  { %p1716_p13 = scmp.ne.s32.totalorder %s50_s30, %s1715_s0  ;;  %p1721_p1 = scmp.lt.s32.totalorder %s1715_s0, %s1715_s0 }
  0x40   :  { %p1722_p2 = por %p1721_p1, %p1720_p0 }
  0x42   :  { %p1723_p3 = pnand %p1722_p2, %p1716_p13 }
  0x44   :  { %1726 = shalt.err (!%p1723_p3)
}
  0x45   :  { %55 = dma.hbm_to_vmem [thread:$0]  %s2080_s3, 1024, %s50_s30, [#allocation6], %s1780_s19, %s1780_s19, %s1781_s20  }
  0x46   :  { %s1727_s23 = scalar_lea.hbm %s2084_s7, 1024 }
  0x47   :  { %p1728_p4 = scmp.ne.s32.totalorder %s2084_s7, %s1727_s23  ;;  %p1731_p5 = scmp.lt.u32.totalorder %s1727_s23, %s2084_s7 }
  0x49   :  { %p1733_p6 = pnand %p1731_p5, %p1728_p4 }
  0x4b   :  { %1736 = shalt.err (!%p1733_p6)
}
  0x4c   :  { %s1737_s11 = scalar_lea.vmem %s78_s12, 1024  ;;  %p1742_p8 = scmp.lt.s32.totalorder %s78_s12, %s78_s12 }
  0x4d   :  { %p1738_p7 = scmp.ne.s32.totalorder %s78_s12, %s1737_s11  ;;  %p1743_p9 = scmp.lt.s32.totalorder %s1737_s11, %s1737_s11 }
  0x4f   :  { %p1744_p10 = por %p1743_p9, %p1742_p8 }
  0x51   :  { %p1745_p11 = pnand %p1744_p10, %p1738_p7 }
  0x53   :  { %1748 = shalt.err (!%p1745_p11)
}
  0x54   :  { %83 = dma.hbm_to_vmem [thread:$0]  %s2084_s7, 1024, %s78_s12, [#allocation9], %s1780_s19, %s1780_s19, %s1781_s20  }
  0x55   :  { %1771 = dma.done.wait [#allocation3], 4096  }
  0x56   :  { %1772 = vsyncadd [#allocation3], 4294963200 }
  0x57   :  { %1773 = dma.done.wait [#allocation6], 2048  }
  0x58   :  { %1774 = vsyncadd [#allocation6], 4294965248 }
  0x59   :  { %1775 = dma.done.wait [#allocation9], 2048  }
  0x5a   :  { %1776 = vsyncadd [#allocation9], 4294965248  ;;  %v1607_v0 = vld [vmem:[#allocation5] sm:$0xff]   ;;  %v1608_v1 = vld [vmem:[#allocation5 + $0x8] sm:$0xff]  }
  0x5b   :  { %1405 = vmatprep.subr.bf16.mxu0 %v1607_v0  ;;  %v1609_v2 = vld [vmem:[#allocation5 + $0x10] sm:$0xff]   ;;  %v1610_v3 = vld [vmem:[#allocation5 + $0x18] sm:$0xff]   ;;  %v102_v4 = vld [vmem:[#allocation2] sm:$0xff] }
  0x5c   :  { %1406 = vmatpush3.bf16.msra.mxu0 %v1607_v0  ;;  %v103_v5 = vld [vmem:[#allocation2 + $0x8] sm:$0xff]  ;;  %v1611_v7 = vld [vmem:[#allocation5 + $0x20] sm:$0xff]   ;;  %v1613_v9 = vld [vmem:[#allocation5 + $0x30] sm:$0xff]  }
  0x5d   :  { %1407 = vmatprep.subr.bf16.mxu0 %v1608_v1  ;;  %v134_v6 = vpack.c.bf16 %v103_v5, %v102_v4  ;;  %v1612_v8 = vld [vmem:[#allocation5 + $0x28] sm:$0xff]   ;;  %v1615_v10 = vld [vmem:[#allocation7] sm:$0xff]   ;;  %v1617_v12 = vld [vmem:[#allocation7 + $0x10] sm:$0xff]  }
  0x5e   :  { %v1616_v11 = vld [vmem:[#allocation7 + $0x8] sm:$0xff]   ;;  %1453 = vmatprep.subr.bf16.mxu1 %v1615_v10  ;;  %v1614_v13 = vld [vmem:[#allocation5 + $0x38] sm:$0xff]   ;;  %v104_v14 = vld [vmem:[#allocation2 + $0x10] sm:$0xff] }
  0x5f   :  { %1421 = vmatprep.mubr.bf16.mxu0 %v134_v6  ;;  %1454 = vmatpush3.bf16.msra.mxu1 %v1615_v10  ;;  %v105_v15 = vld [vmem:[#allocation2 + $0x18] sm:$0xff]  ;;  %v106_v17 = vld [vmem:[#allocation2 + $0x20] sm:$0xff]  ;;  %v107_v18 = vld [vmem:[#allocation2 + $0x28] sm:$0xff] }
  0x60   :  { %1408 = vmatpush3.bf16.msra.mxu0 %v1608_v1  ;;  %1455 = vmatprep.subr.bf16.mxu1 %v1616_v11  ;;  %v1618_v16 = vld [vmem:[#allocation7 + $0x18] sm:$0xff]   ;;  %v1619_v19 = vld [vmem:[#allocation7 + $0x20] sm:$0xff]   ;;  %v135_v20 = vpack.c.bf16 %v105_v15, %v104_v14  ;;  %v136_v21 = vpack.c.bf16 %v107_v18, %v106_v17  ;;  %v108_v22 = vld [vmem:[#allocation2 + $0x30] sm:$0xff] }
  0x61   :  { %1409 = vmatprep.subr.bf16.mxu0 %v1609_v2  ;;  %v109_v23 = vld [vmem:[#allocation2 + $0x38] sm:$0xff]  ;;  %v1620_v24 = vld [vmem:[#allocation7 + $0x28] sm:$0xff]   ;;  %v110_v25 = vld [vmem:[#allocation2 + $0x40] sm:$0xff] }
  0x62   :  { %v111_v26 = vld [vmem:[#allocation2 + $0x48] sm:$0xff]  ;;  %v137_v27 = vpack.c.bf16 %v109_v23, %v108_v22  ;;  %v112_v29 = vld [vmem:[#allocation2 + $0x50] sm:$0xff]  ;;  %v113_v30 = vld [vmem:[#allocation2 + $0x58] sm:$0xff] }
  0x63   :  { %1456 = vmatpush3.bf16.msra.mxu1 %v1616_v11  ;;  %v138_v28 = vpack.c.bf16 %v111_v26, %v110_v25  ;;  %v114_v31 = vld [vmem:[#allocation2 + $0x60] sm:$0xff]  ;;  %v115_v32 = vld [vmem:[#allocation2 + $0x68] sm:$0xff]  ;;  %v139_v33 = vpack.c.bf16 %v113_v30, %v112_v29  ;;  %v116_v35 = vld [vmem:[#allocation2 + $0x70] sm:$0xff] }
  0x64   :  { %1410 = vmatpush3.bf16.msra.mxu0 %v1609_v2  ;;  %1457 = vmatprep.subr.bf16.mxu1 %v1617_v12  ;;  %v140_v34 = vpack.c.bf16 %v115_v32, %v114_v31  ;;  %v117_v36 = vld [vmem:[#allocation2 + $0x78] sm:$0xff]  ;;  %v118_v37 = vld [vmem:[#allocation2 + $0x80] sm:$0xff]  ;;  %v119_v38 = vld [vmem:[#allocation2 + $0x88] sm:$0xff] }
  0x65   :  { %1411 = vmatprep.subr.bf16.mxu0 %v1610_v3  ;;  %v141_v39 = vpack.c.bf16 %v117_v36, %v116_v35  ;;  %v142_v40 = vpack.c.bf16 %v119_v38, %v118_v37  ;;  %v120_v41 = vld [vmem:[#allocation2 + $0x90] sm:$0xff]  ;;  %v121_v42 = vld [vmem:[#allocation2 + $0x98] sm:$0xff]  ;;  %v122_v43 = vld [vmem:[#allocation2 + $0xa0] sm:$0xff] }
  0x66   :  { %v123_v44 = vld [vmem:[#allocation2 + $0xa8] sm:$0xff]  ;;  %v143_v45 = vpack.c.bf16 %v121_v42, %v120_v41  ;;  %v124_v47 = vld [vmem:[#allocation2 + $0xb0] sm:$0xff]  ;;  %v125_v48 = vld [vmem:[#allocation2 + $0xb8] sm:$0xff] }
  0x67   :  { %1458 = vmatpush3.bf16.msra.mxu1 %v1617_v12  ;;  %v144_v46 = vpack.c.bf16 %v123_v44, %v122_v43  ;;  %v126_v49 = vld [vmem:[#allocation2 + $0xc0] sm:$0xff]  ;;  %v127_v50 = vld [vmem:[#allocation2 + $0xc8] sm:$0xff]  ;;  %v145_v51 = vpack.c.bf16 %v125_v48, %v124_v47  ;;  %v128_v53 = vld [vmem:[#allocation2 + $0xd0] sm:$0xff] }
  0x68   :  { %1412 = vmatpush3.bf16.msra.mxu0 %v1610_v3  ;;  %1459 = vmatprep.subr.bf16.mxu1 %v1618_v16  ;;  %v146_v52 = vpack.c.bf16 %v127_v50, %v126_v49  ;;  %v129_v54 = vld [vmem:[#allocation2 + $0xd8] sm:$0xff]  ;;  %v130_v55 = vld [vmem:[#allocation2 + $0xe0] sm:$0xff]  ;;  %v131_v56 = vld [vmem:[#allocation2 + $0xe8] sm:$0xff] }
  0x69   :  { %1413 = vmatprep.subr.bf16.mxu0 %v1611_v7  ;;  %v147_v57 = vpack.c.bf16 %v129_v54, %v128_v53  ;;  %v148_v58 = vpack.c.bf16 %v131_v56, %v130_v55  ;;  %v132_v59 = vld [vmem:[#allocation2 + $0xf0] sm:$0xff]  ;;  %v133_v60 = vld [vmem:[#allocation2 + $0xf8] sm:$0xff]  ;;  %v1623_v0 = vld [vmem:[#allocation8] sm:$0xff]  }
  0x6a   :  { %v149_v61 = vpack.c.bf16 %v133_v60, %v132_v59  ;;  %v1621_v62 = vld [vmem:[#allocation7 + $0x30] sm:$0xff]   ;;  %v1622_v63 = vld [vmem:[#allocation7 + $0x38] sm:$0xff]   ;;  %v1624_v1 = vld [vmem:[#allocation8 + $0x8] sm:$0xff]  }
  0x6b   :  { %1460 = vmatpush3.bf16.msra.mxu1 %v1618_v16  ;;  %v1625_v2 = vld [vmem:[#allocation8 + $0x10] sm:$0xff]   ;;  %v1626_v3 = vld [vmem:[#allocation8 + $0x18] sm:$0xff]   ;;  %v1627_v4 = vld [vmem:[#allocation8 + $0x20] sm:$0xff]  }
  0x6c   :  { %1414 = vmatpush3.bf16.msra.mxu0 %v1611_v7  ;;  %1461 = vmatprep.subr.bf16.mxu1 %v1619_v19  ;;  %v1628_v5 = vld [vmem:[#allocation8 + $0x28] sm:$0xff]   ;;  %v1629_v6 = vld [vmem:[#allocation8 + $0x30] sm:$0xff]   ;;  %v1917_v7 = vld [vmem:[%s2079_s2] ss:$0 sm:$0xff] }
  0x6d   :  { %1415 = vmatprep.subr.bf16.mxu0 %v1612_v8 }
  0x6f   :  { %1462 = vmatpush3.bf16.msra.mxu1 %v1619_v19 }
  0x70   :  { %1416 = vmatpush3.bf16.msra.mxu0 %v1612_v8  ;;  %1463 = vmatprep.subr.bf16.mxu1 %v1620_v24 }
  0x71   :  { %1417 = vmatprep.subr.bf16.mxu0 %v1613_v9 }
  0x73   :  { %1464 = vmatpush3.bf16.msra.mxu1 %v1620_v24 }
  0x74   :  { %1418 = vmatpush3.bf16.msra.mxu0 %v1613_v9  ;;  %1465 = vmatprep.subr.bf16.mxu1 %v1621_v62 }
  0x75   :  { %1419 = vmatprep.subr.bf16.mxu0 %v1614_v13 }
  0x77   :  { %1466 = vmatpush3.bf16.msra.mxu1 %v1621_v62 }
  0x78   :  { %1420 = vmatpush3.bf16.msra.mxu0 %v1614_v13  ;;  %1467 = vmatprep.subr.bf16.mxu1 %v1622_v63 }
  0x79   :  { %1501 = vmatprep.subr.bf16.mxu0 %v1623_v0 }
  0x7b   :  { %1422 = vmatmul.mubr.bf16.vlgmr.msra.gmra.mrb[0].mxu0 %v135_v20  ;;  %1468 = vmatpush3.bf16.msra.mxu1 %v1622_v63 }
  0x7c   :  { %1425 = vmatprep.mubr.bf16.mxu0 %v136_v21  ;;  %1502 = vmatpush3.bf16.msra.mxu0 %v1623_v0 }
  0x7d   :  { %1503 = vmatprep.subr.bf16.mxu0 %v1624_v1 }
  0x80   :  { %1504 = vmatpush3.bf16.msra.mxu0 %v1624_v1 }
  0x81   :  { %1505 = vmatprep.subr.bf16.mxu0 %v1625_v2 }
  0x83   :  { %1426 = vmatmul.mubr.bf16.gmra.mrb[4].mxu0 %v137_v27 }
  0x84   :  { %1429 = vmatprep.mubr.bf16.mxu0 %v138_v28  ;;  %1506 = vmatpush3.bf16.msra.mxu0 %v1625_v2 }
  0x85   :  { %1507 = vmatprep.subr.bf16.mxu0 %v1626_v3 }
  0x88   :  { %1508 = vmatpush3.bf16.msra.mxu0 %v1626_v3 }
  0x89   :  { %1509 = vmatprep.subr.bf16.mxu0 %v1627_v4 }
  0x8b   :  { %1430 = vmatmul.mubr.bf16.gmra.mrb[8].mxu0 %v139_v33 }
  0x8c   :  { %1433 = vmatprep.mubr.bf16.mxu0 %v140_v34  ;;  %1510 = vmatpush3.bf16.msra.mxu0 %v1627_v4 }
  0x8d   :  { %1511 = vmatprep.subr.bf16.mxu0 %v1628_v5 }
  0x90   :  { %1512 = vmatpush3.bf16.msra.mxu0 %v1628_v5 }
  0x91   :  { %1513 = vmatprep.subr.bf16.mxu0 %v1629_v6 }
  0x93   :  { %1434 = vmatmul.mubr.bf16.gmra.mrb[12].mxu0 %v141_v39 }
  0x94   :  { %1437 = vmatprep.mubr.bf16.mxu0 %v142_v40  ;;  %1514 = vmatpush3.bf16.msra.mxu0 %v1629_v6 }
  0x9b   :  { %1438 = vmatmul.mubr.bf16.gmra.mrb[16].mxu0 %v143_v45 }
  0x9c   :  { %1441 = vmatprep.mubr.bf16.mxu0 %v144_v46 }
  0xa3   :  { %1442 = vmatmul.mubr.bf16.gmra.mrb[20].mxu0 %v145_v51 }
  0xa4   :  { %1445 = vmatprep.mubr.bf16.mxu0 %v146_v52 }
  0xab   :  { %1446 = vmatmul.mubr.bf16.gmra.mrb[24].mxu0 %v147_v57 }
  0xac   :  { %1449 = vmatprep.mubr.bf16.mxu0 %v148_v58 }
  0xb3   :  { %1450 = vmatmul.mubr.bf16.gmra.mrb[28].mxu0 %v149_v61 }
 0x14e   :  { %v1423_v8 = vpop.f32.mrb[0].mxu0 }
 0x14f   :  { %v264_v9 = vadd.f32 %v1423_v8, %v1917_v7  ;;  %v255_v10 = vpop.f32.mrb[1].mxu0 }
 0x150   :  { %v256_v11 = vadd.f32 %v1917_v7, %v255_v10  ;;  %v1424_v12 = vpop.f32.mrb[2].mxu0 }
 0x151   :  { %v267_v13 = vadd.f32 %v1424_v12, %v1917_v7  ;;  %v258_v14 = vpop.f32.mrb[3].mxu0  ;;  %v384_v16 = vmax.f32 %v264_v9, 0.0 }
 0x152   :  { %v259_v15 = vadd.f32 %v1917_v7, %v258_v14  ;;  %v382_v18 = vmax.f32 %v256_v11, 0.0 }
 0x153   :  { %v385_v17 = vmax.f32 %v267_v13, 0.0 }
 0x154   :  { %v383_v19 = vmax.f32 %v259_v15, 0.0 }
 0x155   :  { %v415_v20 = vpack.c.bf16 %v385_v17, %v384_v16 }
 0x156   :  { %v1427_v21 = vpop.f32.mrb[4].mxu0  ;;  %v414_v22 = vpack.c.bf16 %v383_v19, %v382_v18 }
 0x157   :  { %v280_v23 = vadd.f32 %v1427_v21, %v1917_v7  ;;  %v271_v24 = vpop.f32.mrb[5].mxu0 }
 0x158   :  { %v272_v25 = vadd.f32 %v1917_v7, %v271_v24  ;;  %v1428_v26 = vpop.f32.mrb[6].mxu0  ;;  %1469 = vmatprep.mubr.bf16.mxu1 %v414_v22 }
 0x159   :  { %v283_v27 = vadd.f32 %v1428_v26, %v1917_v7  ;;  %v274_v28 = vpop.f32.mrb[7].mxu0  ;;  %1470 = vmatmul.mubr.bf16.vlgmr.msra.gmra.mrb[0].mxu1 %v415_v20  ;;  %v388_v30 = vmax.f32 %v280_v23, 0.0 }
 0x15a   :  { %v275_v29 = vadd.f32 %v1917_v7, %v274_v28  ;;  %v386_v32 = vmax.f32 %v272_v25, 0.0 }
 0x15b   :  { %v389_v31 = vmax.f32 %v283_v27, 0.0 }
 0x15c   :  { %v387_v33 = vmax.f32 %v275_v29, 0.0 }
 0x15d   :  { %v417_v34 = vpack.c.bf16 %v389_v31, %v388_v30 }
 0x15e   :  { %v416_v35 = vpack.c.bf16 %v387_v33, %v386_v32  ;;  %v1431_v36 = vpop.f32.mrb[8].mxu0 }
 0x15f   :  { %v296_v37 = vadd.f32 %v1431_v36, %v1917_v7  ;;  %v287_v38 = vpop.f32.mrb[9].mxu0 }
 0x160   :  { %v288_v39 = vadd.f32 %v1917_v7, %v287_v38  ;;  %v1432_v40 = vpop.f32.mrb[10].mxu0  ;;  %1473 = vmatprep.mubr.bf16.mxu1 %v416_v35 }
 0x161   :  { %v299_v41 = vadd.f32 %v1432_v40, %v1917_v7  ;;  %v290_v42 = vpop.f32.mrb[11].mxu0  ;;  %1474 = vmatmul.mubr.bf16.gmra.mrb[4].mxu1 %v417_v34  ;;  %v392_v44 = vmax.f32 %v296_v37, 0.0 }
 0x162   :  { %v291_v43 = vadd.f32 %v1917_v7, %v290_v42  ;;  %v390_v46 = vmax.f32 %v288_v39, 0.0 }
 0x163   :  { %v393_v45 = vmax.f32 %v299_v41, 0.0 }
 0x164   :  { %v391_v47 = vmax.f32 %v291_v43, 0.0 }
 0x165   :  { %v419_v48 = vpack.c.bf16 %v393_v45, %v392_v44 }
 0x166   :  { %v418_v49 = vpack.c.bf16 %v391_v47, %v390_v46  ;;  %v1435_v50 = vpop.f32.mrb[12].mxu0 }
 0x167   :  { %v312_v51 = vadd.f32 %v1435_v50, %v1917_v7  ;;  %v303_v52 = vpop.f32.mrb[13].mxu0 }
 0x168   :  { %v304_v53 = vadd.f32 %v1917_v7, %v303_v52  ;;  %v1436_v54 = vpop.f32.mrb[14].mxu0  ;;  %1477 = vmatprep.mubr.bf16.mxu1 %v418_v49 }
 0x169   :  { %v315_v55 = vadd.f32 %v1436_v54, %v1917_v7  ;;  %v306_v56 = vpop.f32.mrb[15].mxu0  ;;  %1478 = vmatmul.mubr.bf16.gmra.mrb[8].mxu1 %v419_v48  ;;  %v396_v58 = vmax.f32 %v312_v51, 0.0 }
 0x16a   :  { %v307_v57 = vadd.f32 %v1917_v7, %v306_v56  ;;  %v394_v60 = vmax.f32 %v304_v53, 0.0 }
 0x16b   :  { %v397_v59 = vmax.f32 %v315_v55, 0.0 }
 0x16c   :  { %v395_v61 = vmax.f32 %v307_v57, 0.0  ;;  %v1630_v57 = vld [vmem:[#allocation8 + $0x38] sm:$0xff]  }
 0x16d   :  { %v421_v62 = vpack.c.bf16 %v397_v59, %v396_v58  ;;  %1515 = vmatprep.subr.bf16.mxu0 %v1630_v57  ;;  %v1631_v58 = vld [vmem:[#allocation10] sm:$0xff]   ;;  %v1632_v59 = vld [vmem:[#allocation10 + $0x8] sm:$0xff]  }
 0x16e   :  { %v420_v63 = vpack.c.bf16 %v395_v61, %v394_v60  ;;  %v1439_v0 = vpop.f32.mrb[16].mxu0  ;;  %1516 = vmatpush3.bf16.msra.mxu0 %v1630_v57  ;;  %1549 = vmatprep.subr.bf16.mxu1 %v1631_v58  ;;  %v1633_v60 = vld [vmem:[#allocation10 + $0x10] sm:$0xff]   ;;  %v1635_v61 = vld [vmem:[#allocation10 + $0x20] sm:$0xff]  }
 0x16f   :  { %v328_v1 = vadd.f32 %v1439_v0, %v1917_v7  ;;  %v319_v2 = vpop.f32.mrb[17].mxu0  ;;  %1550 = vmatpush3.bf16.msra.mxu1 %v1631_v58  ;;  %v1954_v0 = vld [vmem:[%s2081_s4] ss:$0 sm:$0xff] }
 0x170   :  { %v320_v3 = vadd.f32 %v1917_v7, %v319_v2  ;;  %v1440_v4 = vpop.f32.mrb[18].mxu0  ;;  %1481 = vmatprep.mubr.bf16.mxu1 %v420_v63  ;;  %1551 = vmatprep.subr.bf16.mxu1 %v1632_v59  ;;  %v1637_v63 = vld [vmem:[#allocation10 + $0x30] sm:$0xff]  }
 0x171   :  { %v331_v5 = vadd.f32 %v1440_v4, %v1917_v7  ;;  %v322_v6 = vpop.f32.mrb[19].mxu0  ;;  %1482 = vmatmul.mubr.bf16.gmra.mrb[12].mxu1 %v421_v62  ;;  %v400_v9 = vmax.f32 %v328_v1, 0.0  ;;  %v1636_v62 = vld [vmem:[#allocation10 + $0x28] sm:$0xff]  }
 0x172   :  { %v323_v8 = vadd.f32 %v1917_v7, %v322_v6  ;;  %v398_v11 = vmax.f32 %v320_v3, 0.0 }
 0x173   :  { %v401_v10 = vmax.f32 %v331_v5, 0.0  ;;  %1552 = vmatpush3.bf16.msra.mxu1 %v1632_v59 }
 0x174   :  { %v399_v12 = vmax.f32 %v323_v8, 0.0  ;;  %1553 = vmatprep.subr.bf16.mxu1 %v1633_v60 }
 0x175   :  { %v423_v13 = vpack.c.bf16 %v401_v10, %v400_v9 }
 0x176   :  { %v422_v14 = vpack.c.bf16 %v399_v12, %v398_v11  ;;  %v1443_v15 = vpop.f32.mrb[20].mxu0 }
 0x177   :  { %v344_v16 = vadd.f32 %v1443_v15, %v1917_v7  ;;  %v335_v17 = vpop.f32.mrb[21].mxu0  ;;  %1554 = vmatpush3.bf16.msra.mxu1 %v1633_v60 }
 0x178   :  { %v336_v18 = vadd.f32 %v1917_v7, %v335_v17  ;;  %v1444_v19 = vpop.f32.mrb[22].mxu0  ;;  %1485 = vmatprep.mubr.bf16.mxu1 %v422_v14 }
 0x179   :  { %v347_v20 = vadd.f32 %v1444_v19, %v1917_v7  ;;  %v338_v21 = vpop.f32.mrb[23].mxu0  ;;  %1486 = vmatmul.mubr.bf16.gmra.mrb[16].mxu1 %v423_v13  ;;  %v404_v23 = vmax.f32 %v344_v16, 0.0 }
 0x17a   :  { %v339_v22 = vadd.f32 %v1917_v7, %v338_v21  ;;  %v402_v25 = vmax.f32 %v336_v18, 0.0 }
 0x17b   :  { %v405_v24 = vmax.f32 %v347_v20, 0.0 }
 0x17c   :  { %v403_v26 = vmax.f32 %v339_v22, 0.0 }
 0x17d   :  { %v425_v27 = vpack.c.bf16 %v405_v24, %v404_v23 }
 0x17e   :  { %v424_v28 = vpack.c.bf16 %v403_v26, %v402_v25  ;;  %v1447_v29 = vpop.f32.mrb[24].mxu0 }
 0x17f   :  { %v360_v30 = vadd.f32 %v1447_v29, %v1917_v7  ;;  %v351_v31 = vpop.f32.mrb[25].mxu0 }
 0x180   :  { %v352_v32 = vadd.f32 %v1917_v7, %v351_v31  ;;  %v1448_v33 = vpop.f32.mrb[26].mxu0  ;;  %1489 = vmatprep.mubr.bf16.mxu1 %v424_v28 }
 0x181   :  { %v363_v34 = vadd.f32 %v1448_v33, %v1917_v7  ;;  %v354_v35 = vpop.f32.mrb[27].mxu0  ;;  %1490 = vmatmul.mubr.bf16.gmra.mrb[20].mxu1 %v425_v27  ;;  %v408_v37 = vmax.f32 %v360_v30, 0.0 }
 0x182   :  { %v355_v36 = vadd.f32 %v1917_v7, %v354_v35  ;;  %v406_v39 = vmax.f32 %v352_v32, 0.0 }
 0x183   :  { %v409_v38 = vmax.f32 %v363_v34, 0.0 }
 0x184   :  { %v407_v40 = vmax.f32 %v355_v36, 0.0 }
 0x185   :  { %v427_v41 = vpack.c.bf16 %v409_v38, %v408_v37 }
 0x186   :  { %v426_v42 = vpack.c.bf16 %v407_v40, %v406_v39  ;;  %v1451_v43 = vpop.f32.mrb[28].mxu0 }
 0x187   :  { %v376_v44 = vadd.f32 %v1451_v43, %v1917_v7  ;;  %v367_v45 = vpop.f32.mrb[29].mxu0 }
 0x188   :  { %v368_v46 = vadd.f32 %v1917_v7, %v367_v45  ;;  %v1452_v47 = vpop.f32.mrb[30].mxu0  ;;  %1493 = vmatprep.mubr.bf16.mxu1 %v426_v42 }
 0x189   :  { %v379_v48 = vadd.f32 %v1452_v47, %v1917_v7  ;;  %v370_v49 = vpop.f32.mrb[31].mxu0  ;;  %1494 = vmatmul.mubr.bf16.gmra.mrb[24].mxu1 %v427_v41  ;;  %v412_v51 = vmax.f32 %v376_v44, 0.0 }
 0x18a   :  { %v371_v50 = vadd.f32 %v1917_v7, %v370_v49  ;;  %v410_v53 = vmax.f32 %v368_v46, 0.0  ;;  %v1634_v7 = vld [vmem:[#allocation10 + $0x18] sm:$0xff]  }
 0x18b   :  { %v413_v52 = vmax.f32 %v379_v48, 0.0  ;;  %1555 = vmatprep.subr.bf16.mxu1 %v1634_v7 }
 0x18c   :  { %v411_v54 = vmax.f32 %v371_v50, 0.0  ;;  %1556 = vmatpush3.bf16.msra.mxu1 %v1634_v7 }
 0x18d   :  { %v429_v55 = vpack.c.bf16 %v413_v52, %v412_v51  ;;  %1557 = vmatprep.subr.bf16.mxu1 %v1635_v61 }
 0x18e   :  { %v428_v56 = vpack.c.bf16 %v411_v54, %v410_v53 }
 0x190   :  { %1497 = vmatprep.mubr.bf16.mxu1 %v428_v56  ;;  %1558 = vmatpush3.bf16.msra.mxu1 %v1635_v61 }
 0x191   :  { %1498 = vmatmul.mubr.bf16.gmra.mrb[28].mxu1 %v429_v55  ;;  %1559 = vmatprep.subr.bf16.mxu1 %v1636_v62 }
 0x194   :  { %1560 = vmatpush3.bf16.msra.mxu1 %v1636_v62 }
 0x195   :  { %1561 = vmatprep.subr.bf16.mxu1 %v1637_v63 }
 0x198   :  { %1562 = vmatpush3.bf16.msra.mxu1 %v1637_v63 }
 0x22c   :  { %v1471_v1 = vpop.f32.mrb[0].mxu1 }
 0x22d   :  { %v544_v2 = vadd.f32 %v1471_v1, %v1954_v0  ;;  %v535_v3 = vpop.f32.mrb[1].mxu1 }
 0x22e   :  { %v536_v4 = vadd.f32 %v1954_v0, %v535_v3  ;;  %v1472_v5 = vpop.f32.mrb[2].mxu1 }
 0x22f   :  { %v547_v6 = vadd.f32 %v1472_v5, %v1954_v0  ;;  %v538_v8 = vpop.f32.mrb[3].mxu1  ;;  %v664_v10 = vmax.f32 %v544_v2, 0.0 }
 0x230   :  { %v539_v9 = vadd.f32 %v1954_v0, %v538_v8  ;;  %v662_v12 = vmax.f32 %v536_v4, 0.0 }
 0x231   :  { %v665_v11 = vmax.f32 %v547_v6, 0.0 }
 0x232   :  { %v663_v13 = vmax.f32 %v539_v9, 0.0 }
 0x233   :  { %v695_v14 = vpack.c.bf16 %v665_v11, %v664_v10 }
 0x234   :  { %v694_v15 = vpack.c.bf16 %v663_v13, %v662_v12  ;;  %v1475_v16 = vpop.f32.mrb[4].mxu1 }
 0x235   :  { %v560_v17 = vadd.f32 %v1475_v16, %v1954_v0  ;;  %v551_v18 = vpop.f32.mrb[5].mxu1 }
 0x236   :  { %v552_v19 = vadd.f32 %v1954_v0, %v551_v18  ;;  %v1476_v20 = vpop.f32.mrb[6].mxu1  ;;  %1517 = vmatprep.mubr.bf16.mxu0 %v694_v15 }
 0x237   :  { %v563_v21 = vadd.f32 %v1476_v20, %v1954_v0  ;;  %v554_v22 = vpop.f32.mrb[7].mxu1  ;;  %1518 = vmatmul.mubr.bf16.vlgmr.msra.gmra.mrb[32].mxu0 %v695_v14  ;;  %v668_v24 = vmax.f32 %v560_v17, 0.0 }
 0x238   :  { %v555_v23 = vadd.f32 %v1954_v0, %v554_v22  ;;  %v666_v26 = vmax.f32 %v552_v19, 0.0 }
 0x239   :  { %v669_v25 = vmax.f32 %v563_v21, 0.0 }
 0x23a   :  { %v667_v27 = vmax.f32 %v555_v23, 0.0 }
 0x23b   :  { %v697_v28 = vpack.c.bf16 %v669_v25, %v668_v24 }
 0x23c   :  { %v696_v29 = vpack.c.bf16 %v667_v27, %v666_v26  ;;  %v1479_v30 = vpop.f32.mrb[8].mxu1 }
 0x23d   :  { %v576_v31 = vadd.f32 %v1479_v30, %v1954_v0  ;;  %v567_v32 = vpop.f32.mrb[9].mxu1 }
 0x23e   :  { %v568_v33 = vadd.f32 %v1954_v0, %v567_v32  ;;  %v1480_v34 = vpop.f32.mrb[10].mxu1  ;;  %1521 = vmatprep.mubr.bf16.mxu0 %v696_v29 }
 0x23f   :  { %v579_v35 = vadd.f32 %v1480_v34, %v1954_v0  ;;  %v570_v36 = vpop.f32.mrb[11].mxu1  ;;  %1522 = vmatmul.mubr.bf16.gmra.mrb[36].mxu0 %v697_v28  ;;  %v672_v38 = vmax.f32 %v576_v31, 0.0 }
 0x240   :  { %v571_v37 = vadd.f32 %v1954_v0, %v570_v36  ;;  %v670_v40 = vmax.f32 %v568_v33, 0.0 }
 0x241   :  { %v673_v39 = vmax.f32 %v579_v35, 0.0 }
 0x242   :  { %v671_v41 = vmax.f32 %v571_v37, 0.0 }
 0x243   :  { %v699_v42 = vpack.c.bf16 %v673_v39, %v672_v38 }
 0x244   :  { %v698_v43 = vpack.c.bf16 %v671_v41, %v670_v40  ;;  %v1483_v44 = vpop.f32.mrb[12].mxu1 }
 0x245   :  { %v592_v45 = vadd.f32 %v1483_v44, %v1954_v0  ;;  %v583_v46 = vpop.f32.mrb[13].mxu1 }
 0x246   :  { %v584_v47 = vadd.f32 %v1954_v0, %v583_v46  ;;  %v1484_v48 = vpop.f32.mrb[14].mxu1  ;;  %1525 = vmatprep.mubr.bf16.mxu0 %v698_v43 }
 0x247   :  { %v595_v49 = vadd.f32 %v1484_v48, %v1954_v0  ;;  %v586_v50 = vpop.f32.mrb[15].mxu1  ;;  %1526 = vmatmul.mubr.bf16.gmra.mrb[40].mxu0 %v699_v42  ;;  %v676_v52 = vmax.f32 %v592_v45, 0.0 }
 0x248   :  { %v587_v51 = vadd.f32 %v1954_v0, %v586_v50  ;;  %v674_v54 = vmax.f32 %v584_v47, 0.0 }
 0x249   :  { %v677_v53 = vmax.f32 %v595_v49, 0.0 }
 0x24a   :  { %v675_v55 = vmax.f32 %v587_v51, 0.0  ;;  %v1638_v51 = vld [vmem:[#allocation10 + $0x38] sm:$0xff]  }
 0x24b   :  { %v701_v56 = vpack.c.bf16 %v677_v53, %v676_v52  ;;  %1563 = vmatprep.subr.bf16.mxu1 %v1638_v51  ;;  %v1991_v52 = vld [vmem:[%s2083_s6] ss:$0 sm:$0xff] }
 0x24c   :  { %v700_v57 = vpack.c.bf16 %v675_v55, %v674_v54  ;;  %v1487_v58 = vpop.f32.mrb[16].mxu1  ;;  %1564 = vmatpush3.bf16.msra.mxu1 %v1638_v51 }
 0x24d   :  { %v608_v59 = vadd.f32 %v1487_v58, %v1954_v0  ;;  %v599_v60 = vpop.f32.mrb[17].mxu1 }
 0x24e   :  { %v600_v7 = vadd.f32 %v1954_v0, %v599_v60  ;;  %v1488_v61 = vpop.f32.mrb[18].mxu1  ;;  %1529 = vmatprep.mubr.bf16.mxu0 %v700_v57 }
 0x24f   :  { %v611_v62 = vadd.f32 %v1488_v61, %v1954_v0  ;;  %v602_v63 = vpop.f32.mrb[19].mxu1  ;;  %1530 = vmatmul.mubr.bf16.gmra.mrb[44].mxu0 %v701_v56  ;;  %v680_v2 = vmax.f32 %v608_v59, 0.0 }
 0x250   :  { %v603_v1 = vadd.f32 %v1954_v0, %v602_v63  ;;  %v678_v4 = vmax.f32 %v600_v7, 0.0 }
 0x251   :  { %v681_v3 = vmax.f32 %v611_v62, 0.0 }
 0x252   :  { %v679_v5 = vmax.f32 %v603_v1, 0.0 }
 0x253   :  { %v703_v6 = vpack.c.bf16 %v681_v3, %v680_v2 }
 0x254   :  { %v702_v8 = vpack.c.bf16 %v679_v5, %v678_v4  ;;  %v1491_v9 = vpop.f32.mrb[20].mxu1 }
 0x255   :  { %v624_v10 = vadd.f32 %v1491_v9, %v1954_v0  ;;  %v615_v11 = vpop.f32.mrb[21].mxu1 }
 0x256   :  { %v616_v12 = vadd.f32 %v1954_v0, %v615_v11  ;;  %v1492_v13 = vpop.f32.mrb[22].mxu1  ;;  %1533 = vmatprep.mubr.bf16.mxu0 %v702_v8 }
 0x257   :  { %v627_v14 = vadd.f32 %v1492_v13, %v1954_v0  ;;  %v618_v15 = vpop.f32.mrb[23].mxu1  ;;  %1534 = vmatmul.mubr.bf16.gmra.mrb[48].mxu0 %v703_v6  ;;  %v684_v17 = vmax.f32 %v624_v10, 0.0 }
 0x258   :  { %v619_v16 = vadd.f32 %v1954_v0, %v618_v15  ;;  %v682_v19 = vmax.f32 %v616_v12, 0.0 }
 0x259   :  { %v685_v18 = vmax.f32 %v627_v14, 0.0 }
 0x25a   :  { %v683_v20 = vmax.f32 %v619_v16, 0.0 }
 0x25b   :  { %v705_v21 = vpack.c.bf16 %v685_v18, %v684_v17 }
 0x25c   :  { %v704_v22 = vpack.c.bf16 %v683_v20, %v682_v19  ;;  %v1495_v23 = vpop.f32.mrb[24].mxu1 }
 0x25d   :  { %v640_v24 = vadd.f32 %v1495_v23, %v1954_v0  ;;  %v631_v25 = vpop.f32.mrb[25].mxu1 }
 0x25e   :  { %v632_v26 = vadd.f32 %v1954_v0, %v631_v25  ;;  %v1496_v27 = vpop.f32.mrb[26].mxu1  ;;  %1537 = vmatprep.mubr.bf16.mxu0 %v704_v22 }
 0x25f   :  { %v643_v28 = vadd.f32 %v1496_v27, %v1954_v0  ;;  %v634_v29 = vpop.f32.mrb[27].mxu1  ;;  %1538 = vmatmul.mubr.bf16.gmra.mrb[52].mxu0 %v705_v21  ;;  %v688_v31 = vmax.f32 %v640_v24, 0.0 }
 0x260   :  { %v635_v30 = vadd.f32 %v1954_v0, %v634_v29  ;;  %v686_v33 = vmax.f32 %v632_v26, 0.0 }
 0x261   :  { %v689_v32 = vmax.f32 %v643_v28, 0.0 }
 0x262   :  { %v687_v34 = vmax.f32 %v635_v30, 0.0 }
 0x263   :  { %v707_v35 = vpack.c.bf16 %v689_v32, %v688_v31 }
 0x264   :  { %v706_v36 = vpack.c.bf16 %v687_v34, %v686_v33  ;;  %v1499_v37 = vpop.f32.mrb[28].mxu1 }
 0x265   :  { %v656_v38 = vadd.f32 %v1499_v37, %v1954_v0  ;;  %v647_v39 = vpop.f32.mrb[29].mxu1 }
 0x266   :  { %v648_v40 = vadd.f32 %v1954_v0, %v647_v39  ;;  %v1500_v41 = vpop.f32.mrb[30].mxu1  ;;  %1541 = vmatprep.mubr.bf16.mxu0 %v706_v36 }
 0x267   :  { %v659_v42 = vadd.f32 %v1500_v41, %v1954_v0  ;;  %v650_v43 = vpop.f32.mrb[31].mxu1  ;;  %1542 = vmatmul.mubr.bf16.gmra.mrb[56].mxu0 %v707_v35  ;;  %v692_v45 = vmax.f32 %v656_v38, 0.0 }
 0x268   :  { %v651_v44 = vadd.f32 %v1954_v0, %v650_v43  ;;  %v690_v47 = vmax.f32 %v648_v40, 0.0 }
 0x269   :  { %v693_v46 = vmax.f32 %v659_v42, 0.0 }
 0x26a   :  { %v691_v48 = vmax.f32 %v651_v44, 0.0 }
 0x26b   :  { %v709_v49 = vpack.c.bf16 %v693_v46, %v692_v45 }
 0x26c   :  { %v708_v50 = vpack.c.bf16 %v691_v48, %v690_v47 }
 0x26e   :  { %1545 = vmatprep.mubr.bf16.mxu0 %v708_v50 }
 0x26f   :  { %1546 = vmatmul.mubr.bf16.gmra.mrb[60].mxu0 %v709_v49 }
 0x30a   :  { %v1519_v53 = vpop.f32.mrb[32].mxu0 }
 0x30b   :  { %v824_v54 = vadd.f32 %v1519_v53, %v1991_v52  ;;  %v815_v0 = vpop.f32.mrb[33].mxu0 }
 0x30c   :  { %v816_v55 = vadd.f32 %v1991_v52, %v815_v0  ;;  %v1520_v56 = vpop.f32.mrb[34].mxu0 }
 0x30d   :  { %v827_v57 = vadd.f32 %v1520_v56, %v1991_v52  ;;  %v818_v58 = vpop.f32.mrb[35].mxu0  ;;  %v944_v60 = vmax.f32 %v824_v54, 0.0 }
 0x30e   :  { %v819_v59 = vadd.f32 %v1991_v52, %v818_v58  ;;  %v942_v61 = vmax.f32 %v816_v55, 0.0 }
 0x30f   :  { %v945_v7 = vmax.f32 %v827_v57, 0.0 }
 0x310   :  { %v943_v62 = vmax.f32 %v819_v59, 0.0 }
 0x311   :  { %v975_v63 = vpack.c.bf16 %v945_v7, %v944_v60 }
 0x312   :  { %v974_v1 = vpack.c.bf16 %v943_v62, %v942_v61  ;;  %v1523_v2 = vpop.f32.mrb[36].mxu0 }
 0x313   :  { %v840_v3 = vadd.f32 %v1523_v2, %v1991_v52  ;;  %v831_v4 = vpop.f32.mrb[37].mxu0 }
 0x314   :  { %v832_v5 = vadd.f32 %v1991_v52, %v831_v4  ;;  %v1524_v6 = vpop.f32.mrb[38].mxu0  ;;  %1565 = vmatprep.mubr.bf16.mxu1 %v974_v1 }
 0x315   :  { %v843_v8 = vadd.f32 %v1524_v6, %v1991_v52  ;;  %v834_v9 = vpop.f32.mrb[39].mxu0  ;;  %1566 = vmatmul.mubr.bf16.vlgmr.msra.gmra.mrb[32].mxu1 %v975_v63  ;;  %v948_v11 = vmax.f32 %v840_v3, 0.0 }
 0x316   :  { %v835_v10 = vadd.f32 %v1991_v52, %v834_v9  ;;  %v946_v13 = vmax.f32 %v832_v5, 0.0 }
 0x317   :  { %v949_v12 = vmax.f32 %v843_v8, 0.0 }
 0x318   :  { %v947_v14 = vmax.f32 %v835_v10, 0.0 }
 0x319   :  { %v977_v15 = vpack.c.bf16 %v949_v12, %v948_v11 }
 0x31a   :  { %v976_v16 = vpack.c.bf16 %v947_v14, %v946_v13  ;;  %v1527_v17 = vpop.f32.mrb[40].mxu0 }
 0x31b   :  { %v856_v18 = vadd.f32 %v1527_v17, %v1991_v52  ;;  %v847_v19 = vpop.f32.mrb[41].mxu0 }
 0x31c   :  { %v848_v20 = vadd.f32 %v1991_v52, %v847_v19  ;;  %v1528_v21 = vpop.f32.mrb[42].mxu0  ;;  %1569 = vmatprep.mubr.bf16.mxu1 %v976_v16 }
 0x31d   :  { %v859_v22 = vadd.f32 %v1528_v21, %v1991_v52  ;;  %v850_v23 = vpop.f32.mrb[43].mxu0  ;;  %1570 = vmatmul.mubr.bf16.gmra.mrb[36].mxu1 %v977_v15  ;;  %v952_v25 = vmax.f32 %v856_v18, 0.0 }
 0x31e   :  { %v851_v24 = vadd.f32 %v1991_v52, %v850_v23  ;;  %v950_v27 = vmax.f32 %v848_v20, 0.0 }
 0x31f   :  { %v953_v26 = vmax.f32 %v859_v22, 0.0 }
 0x320   :  { %v951_v28 = vmax.f32 %v851_v24, 0.0 }
 0x321   :  { %v979_v29 = vpack.c.bf16 %v953_v26, %v952_v25 }
 0x322   :  { %v978_v30 = vpack.c.bf16 %v951_v28, %v950_v27  ;;  %v1531_v31 = vpop.f32.mrb[44].mxu0 }
 0x323   :  { %v872_v32 = vadd.f32 %v1531_v31, %v1991_v52  ;;  %v863_v33 = vpop.f32.mrb[45].mxu0 }
 0x324   :  { %v864_v34 = vadd.f32 %v1991_v52, %v863_v33  ;;  %v1532_v35 = vpop.f32.mrb[46].mxu0  ;;  %1573 = vmatprep.mubr.bf16.mxu1 %v978_v30 }
 0x325   :  { %v875_v36 = vadd.f32 %v1532_v35, %v1991_v52  ;;  %v866_v37 = vpop.f32.mrb[47].mxu0  ;;  %1574 = vmatmul.mubr.bf16.gmra.mrb[40].mxu1 %v979_v29  ;;  %v956_v39 = vmax.f32 %v872_v32, 0.0 }
 0x326   :  { %v867_v38 = vadd.f32 %v1991_v52, %v866_v37  ;;  %v954_v41 = vmax.f32 %v864_v34, 0.0 }
 0x327   :  { %v957_v40 = vmax.f32 %v875_v36, 0.0 }
 0x328   :  { %v955_v42 = vmax.f32 %v867_v38, 0.0  ;;  %v2028_v38 = vld [vmem:[%s2085_s8] ss:$0 sm:$0xff]  ;;  %s1788_s8 = smov [#allocation11]  }
 0x329   :  { %v981_v43 = vpack.c.bf16 %v957_v40, %v956_v39  ;;  %s1259_s1 = sshll.u32 %s1788_s8, 4  ;;  %s1260_s1 = int_to_ptr.vmem [resolvable:$true] %s1259_s1 }
 0x32a   :  { %v980_v44 = vpack.c.bf16 %v955_v42, %v954_v41  ;;  %v1535_v45 = vpop.f32.mrb[48].mxu0  ;;  %s1749_s10 = scalar_lea.vmem %s1260_s1, 4096  ;;  %p1754_p13 = scmp.lt.s32.totalorder %s1260_s1, %s1260_s1 }
 0x32b   :  { %v888_v46 = vadd.f32 %v1535_v45, %v1991_v52  ;;  %v879_v47 = vpop.f32.mrb[49].mxu0  ;;  %p1750_p12 = scmp.ne.s32.totalorder %s1260_s1, %s1749_s10  ;;  %p1755_p0 = scmp.lt.s32.totalorder %s1749_s10, %s1749_s10 }
 0x32c   :  { %v880_v48 = vadd.f32 %v1991_v52, %v879_v47  ;;  %v1536_v49 = vpop.f32.mrb[50].mxu0  ;;  %1577 = vmatprep.mubr.bf16.mxu1 %v980_v44 }
 0x32d   :  { %v891_v50 = vadd.f32 %v1536_v49, %v1991_v52  ;;  %v882_v51 = vpop.f32.mrb[51].mxu0  ;;  %1578 = vmatmul.mubr.bf16.gmra.mrb[44].mxu1 %v981_v43  ;;  %v960_v54 = vmax.f32 %v888_v46, 0.0  ;;  %p1756_p1 = por %p1755_p0, %p1754_p13 }
 0x32e   :  { %v883_v53 = vadd.f32 %v1991_v52, %v882_v51  ;;  %v958_v55 = vmax.f32 %v880_v48, 0.0 }
 0x32f   :  { %v961_v0 = vmax.f32 %v891_v50, 0.0  ;;  %p1757_p2 = pnand %p1756_p1, %p1750_p12 }
 0x330   :  { %v959_v56 = vmax.f32 %v883_v53, 0.0 }
 0x331   :  { %v983_v57 = vpack.c.bf16 %v961_v0, %v960_v54 }
 0x332   :  { %v982_v58 = vpack.c.bf16 %v959_v56, %v958_v55  ;;  %v1539_v59 = vpop.f32.mrb[52].mxu0 }
 0x333   :  { %v904_v60 = vadd.f32 %v1539_v59, %v1991_v52  ;;  %v895_v7 = vpop.f32.mrb[53].mxu0 }
 0x334   :  { %v896_v61 = vadd.f32 %v1991_v52, %v895_v7  ;;  %v1540_v62 = vpop.f32.mrb[54].mxu0  ;;  %1581 = vmatprep.mubr.bf16.mxu1 %v982_v58 }
 0x335   :  { %v907_v63 = vadd.f32 %v1540_v62, %v1991_v52  ;;  %v898_v1 = vpop.f32.mrb[55].mxu0  ;;  %1582 = vmatmul.mubr.bf16.gmra.mrb[48].mxu1 %v983_v57  ;;  %v964_v3 = vmax.f32 %v904_v60, 0.0 }
 0x336   :  { %v899_v2 = vadd.f32 %v1991_v52, %v898_v1  ;;  %v962_v5 = vmax.f32 %v896_v61, 0.0 }
 0x337   :  { %v965_v4 = vmax.f32 %v907_v63, 0.0 }
 0x338   :  { %v963_v6 = vmax.f32 %v899_v2, 0.0 }
 0x339   :  { %v985_v8 = vpack.c.bf16 %v965_v4, %v964_v3 }
 0x33a   :  { %v984_v9 = vpack.c.bf16 %v963_v6, %v962_v5  ;;  %v1543_v10 = vpop.f32.mrb[56].mxu0 }
 0x33b   :  { %v920_v11 = vadd.f32 %v1543_v10, %v1991_v52  ;;  %v911_v12 = vpop.f32.mrb[57].mxu0 }
 0x33c   :  { %v912_v13 = vadd.f32 %v1991_v52, %v911_v12  ;;  %v1544_v14 = vpop.f32.mrb[58].mxu0  ;;  %1585 = vmatprep.mubr.bf16.mxu1 %v984_v9 }
 0x33d   :  { %v923_v15 = vadd.f32 %v1544_v14, %v1991_v52  ;;  %v914_v16 = vpop.f32.mrb[59].mxu0  ;;  %1586 = vmatmul.mubr.bf16.gmra.mrb[52].mxu1 %v985_v8  ;;  %v968_v18 = vmax.f32 %v920_v11, 0.0 }
 0x33e   :  { %v915_v17 = vadd.f32 %v1991_v52, %v914_v16  ;;  %v966_v20 = vmax.f32 %v912_v13, 0.0 }
 0x33f   :  { %v969_v19 = vmax.f32 %v923_v15, 0.0 }
 0x340   :  { %v967_v21 = vmax.f32 %v915_v17, 0.0 }
 0x341   :  { %v987_v22 = vpack.c.bf16 %v969_v19, %v968_v18 }
 0x342   :  { %v986_v23 = vpack.c.bf16 %v967_v21, %v966_v20  ;;  %v1547_v24 = vpop.f32.mrb[60].mxu0 }
 0x343   :  { %v936_v25 = vadd.f32 %v1547_v24, %v1991_v52  ;;  %v927_v26 = vpop.f32.mrb[61].mxu0 }
 0x344   :  { %v928_v27 = vadd.f32 %v1991_v52, %v927_v26  ;;  %v1548_v28 = vpop.f32.mrb[62].mxu0  ;;  %1589 = vmatprep.mubr.bf16.mxu1 %v986_v23 }
 0x345   :  { %v939_v29 = vadd.f32 %v1548_v28, %v1991_v52  ;;  %v930_v30 = vpop.f32.mrb[63].mxu0  ;;  %1590 = vmatmul.mubr.bf16.gmra.mrb[56].mxu1 %v987_v22  ;;  %v972_v32 = vmax.f32 %v936_v25, 0.0 }
 0x346   :  { %v931_v31 = vadd.f32 %v1991_v52, %v930_v30  ;;  %v970_v34 = vmax.f32 %v928_v27, 0.0 }
 0x347   :  { %v973_v33 = vmax.f32 %v939_v29, 0.0 }
 0x348   :  { %v971_v35 = vmax.f32 %v931_v31, 0.0 }
 0x349   :  { %v989_v36 = vpack.c.bf16 %v973_v33, %v972_v32 }
 0x34a   :  { %v988_v37 = vpack.c.bf16 %v971_v35, %v970_v34 }
 0x34c   :  { %1593 = vmatprep.mubr.bf16.mxu1 %v988_v37 }
 0x34d   :  { %1594 = vmatmul.mubr.bf16.gmra.mrb[60].mxu1 %v989_v36 }
 0x3e8   :  { %v1567_v39 = vpop.f32.mrb[32].mxu1 }
 0x3e9   :  { %v1104_v40 = vadd.f32 %v1567_v39, %v2028_v38  ;;  %v1095_v41 = vpop.f32.mrb[33].mxu1 }
 0x3ea   :  { %v1096_v42 = vadd.f32 %v2028_v38, %v1095_v41  ;;  %v1568_v52 = vpop.f32.mrb[34].mxu1 }
 0x3eb   :  { %1224 = vst [vmem:[#allocation11 + $0x10] sm:$0xff] %v1104_v40  ;;  %v1107_v43 = vadd.f32 %v1568_v52, %v2028_v38  ;;  %v1098_v44 = vpop.f32.mrb[35].mxu1 }
 0x3ec   :  { %1222 = vst [vmem:[#allocation11] sm:$0xff] %v1096_v42  ;;  %v1099_v45 = vadd.f32 %v2028_v38, %v1098_v44 }
 0x3ed   :  { %1225 = vst [vmem:[#allocation11 + $0x18] sm:$0xff] %v1107_v43 }
 0x3ee   :  { %1223 = vst [vmem:[#allocation11 + $0x8] sm:$0xff] %v1099_v45 }
 0x3f0   :  { %v1571_v46 = vpop.f32.mrb[36].mxu1 }
 0x3f1   :  { %v1120_v47 = vadd.f32 %v1571_v46, %v2028_v38  ;;  %v1111_v48 = vpop.f32.mrb[37].mxu1 }
 0x3f2   :  { %v1112_v49 = vadd.f32 %v2028_v38, %v1111_v48  ;;  %v1572_v50 = vpop.f32.mrb[38].mxu1 }
 0x3f3   :  { %1228 = vst [vmem:[#allocation11 + $0x30] sm:$0xff] %v1120_v47  ;;  %v1123_v51 = vadd.f32 %v1572_v50, %v2028_v38  ;;  %v1114_v53 = vpop.f32.mrb[39].mxu1 }
 0x3f4   :  { %1226 = vst [vmem:[#allocation11 + $0x20] sm:$0xff] %v1112_v49  ;;  %v1115_v54 = vadd.f32 %v2028_v38, %v1114_v53 }
 0x3f5   :  { %1229 = vst [vmem:[#allocation11 + $0x38] sm:$0xff] %v1123_v51 }
 0x3f6   :  { %1227 = vst [vmem:[#allocation11 + $0x28] sm:$0xff] %v1115_v54 }
 0x3f8   :  { %v1575_v0 = vpop.f32.mrb[40].mxu1 }
 0x3f9   :  { %v1136_v55 = vadd.f32 %v1575_v0, %v2028_v38  ;;  %v1127_v56 = vpop.f32.mrb[41].mxu1 }
 0x3fa   :  { %v1128_v57 = vadd.f32 %v2028_v38, %v1127_v56  ;;  %v1576_v58 = vpop.f32.mrb[42].mxu1 }
 0x3fb   :  { %1232 = vst [vmem:[#allocation11 + $0x50] sm:$0xff] %v1136_v55  ;;  %v1139_v59 = vadd.f32 %v1576_v58, %v2028_v38  ;;  %v1130_v60 = vpop.f32.mrb[43].mxu1 }
 0x3fc   :  { %1230 = vst [vmem:[#allocation11 + $0x40] sm:$0xff] %v1128_v57  ;;  %v1131_v7 = vadd.f32 %v2028_v38, %v1130_v60 }
 0x3fd   :  { %1233 = vst [vmem:[#allocation11 + $0x58] sm:$0xff] %v1139_v59 }
 0x3fe   :  { %1231 = vst [vmem:[#allocation11 + $0x48] sm:$0xff] %v1131_v7 }
 0x400   :  { %v1579_v61 = vpop.f32.mrb[44].mxu1 }
 0x401   :  { %v1152_v62 = vadd.f32 %v1579_v61, %v2028_v38  ;;  %v1143_v63 = vpop.f32.mrb[45].mxu1 }
 0x402   :  { %v1144_v1 = vadd.f32 %v2028_v38, %v1143_v63  ;;  %v1580_v2 = vpop.f32.mrb[46].mxu1 }
 0x403   :  { %1236 = vst [vmem:[#allocation11 + $0x70] sm:$0xff] %v1152_v62  ;;  %v1155_v3 = vadd.f32 %v1580_v2, %v2028_v38  ;;  %v1146_v4 = vpop.f32.mrb[47].mxu1 }
 0x404   :  { %1234 = vst [vmem:[#allocation11 + $0x60] sm:$0xff] %v1144_v1  ;;  %v1147_v5 = vadd.f32 %v2028_v38, %v1146_v4 }
 0x405   :  { %1237 = vst [vmem:[#allocation11 + $0x78] sm:$0xff] %v1155_v3 }
 0x406   :  { %1235 = vst [vmem:[#allocation11 + $0x68] sm:$0xff] %v1147_v5 }
 0x408   :  { %v1583_v6 = vpop.f32.mrb[48].mxu1 }
 0x409   :  { %v1168_v8 = vadd.f32 %v1583_v6, %v2028_v38  ;;  %v1159_v9 = vpop.f32.mrb[49].mxu1 }
 0x40a   :  { %v1160_v10 = vadd.f32 %v2028_v38, %v1159_v9  ;;  %v1584_v11 = vpop.f32.mrb[50].mxu1 }
 0x40b   :  { %1240 = vst [vmem:[#allocation11 + $0x90] sm:$0xff] %v1168_v8  ;;  %v1171_v12 = vadd.f32 %v1584_v11, %v2028_v38  ;;  %v1162_v13 = vpop.f32.mrb[51].mxu1 }
 0x40c   :  { %1238 = vst [vmem:[#allocation11 + $0x80] sm:$0xff] %v1160_v10  ;;  %v1163_v14 = vadd.f32 %v2028_v38, %v1162_v13 }
 0x40d   :  { %1241 = vst [vmem:[#allocation11 + $0x98] sm:$0xff] %v1171_v12 }
 0x40e   :  { %1239 = vst [vmem:[#allocation11 + $0x88] sm:$0xff] %v1163_v14 }
 0x410   :  { %v1587_v15 = vpop.f32.mrb[52].mxu1 }
 0x411   :  { %v1184_v16 = vadd.f32 %v1587_v15, %v2028_v38  ;;  %v1175_v17 = vpop.f32.mrb[53].mxu1 }
 0x412   :  { %v1176_v18 = vadd.f32 %v2028_v38, %v1175_v17  ;;  %v1588_v19 = vpop.f32.mrb[54].mxu1 }
 0x413   :  { %1244 = vst [vmem:[#allocation11 + $0xb0] sm:$0xff] %v1184_v16  ;;  %v1187_v20 = vadd.f32 %v1588_v19, %v2028_v38  ;;  %v1178_v21 = vpop.f32.mrb[55].mxu1 }
 0x414   :  { %1242 = vst [vmem:[#allocation11 + $0xa0] sm:$0xff] %v1176_v18  ;;  %v1179_v22 = vadd.f32 %v2028_v38, %v1178_v21 }
 0x415   :  { %1245 = vst [vmem:[#allocation11 + $0xb8] sm:$0xff] %v1187_v20 }
 0x416   :  { %1243 = vst [vmem:[#allocation11 + $0xa8] sm:$0xff] %v1179_v22 }
 0x418   :  { %v1591_v23 = vpop.f32.mrb[56].mxu1 }
 0x419   :  { %v1200_v24 = vadd.f32 %v1591_v23, %v2028_v38  ;;  %v1191_v25 = vpop.f32.mrb[57].mxu1 }
 0x41a   :  { %v1192_v26 = vadd.f32 %v2028_v38, %v1191_v25  ;;  %v1592_v27 = vpop.f32.mrb[58].mxu1 }
 0x41b   :  { %1248 = vst [vmem:[#allocation11 + $0xd0] sm:$0xff] %v1200_v24  ;;  %v1203_v28 = vadd.f32 %v1592_v27, %v2028_v38  ;;  %v1194_v29 = vpop.f32.mrb[59].mxu1 }
 0x41c   :  { %1246 = vst [vmem:[#allocation11 + $0xc0] sm:$0xff] %v1192_v26  ;;  %v1195_v30 = vadd.f32 %v2028_v38, %v1194_v29 }
 0x41d   :  { %1249 = vst [vmem:[#allocation11 + $0xd8] sm:$0xff] %v1203_v28 }
 0x41e   :  { %1247 = vst [vmem:[#allocation11 + $0xc8] sm:$0xff] %v1195_v30 }
 0x420   :  { %v1595_v31 = vpop.f32.mrb[60].mxu1 }
 0x421   :  { %v1216_v32 = vadd.f32 %v1595_v31, %v2028_v38  ;;  %v1207_v33 = vpop.f32.mrb[61].mxu1 }
 0x422   :  { %v1208_v34 = vadd.f32 %v2028_v38, %v1207_v33  ;;  %v1596_v35 = vpop.f32.mrb[62].mxu1 }
 0x423   :  { %1252 = vst [vmem:[#allocation11 + $0xf0] sm:$0xff] %v1216_v32  ;;  %v1219_v36 = vadd.f32 %v1596_v35, %v2028_v38  ;;  %v1210_v37 = vpop.f32.mrb[63].mxu1 }
 0x424   :  { %1250 = vst [vmem:[#allocation11 + $0xe0] sm:$0xff] %v1208_v34  ;;  %v1211_v39 = vadd.f32 %v2028_v38, %v1210_v37 }
 0x425   :  { %1253 = vst [vmem:[#allocation11 + $0xf8] sm:$0xff] %v1219_v36 }
 0x426   :  { %1251 = vst [vmem:[#allocation11 + $0xe8] sm:$0xff] %v1211_v39 }
 0x427   :  { %1760 = shalt.err (!%p1757_p2)
}
 0x428   :  { %s1761_s16 = scalar_lea.hbm %s2086_s9, 4096 }
 0x429   :  { %p1762_p3 = scmp.ne.s32.totalorder %s2086_s9, %s1761_s16  ;;  %p1765_p4 = scmp.lt.u32.totalorder %s1761_s16, %s2086_s9 }
 0x42b   :  { %p1767_p5 = pnand %p1765_p4, %p1762_p3 }
 0x42d   :  { %1770 = shalt.err (!%p1767_p5)
}
 0x42e   :  { %1265 = dma.vmem_to_hbm [thread:$0]  %s1260_s1, 4096, %s2086_s9, [#allocation4], %s1784_s5, %s1784_s5, %s1785_s24  }
 0x42f   :  { %1777 = dma.done.wait [#allocation4], 4096  }
 0x430   :  { %1778 = vsyncadd [#allocation4], 4294963200 }
 0x431   :  { %1269 = vsyncpa [#allocation3], 1 }
 0x432   :  { %1270 = vsyncpa [#allocation6], 1 }
 0x433   :  { %1271 = vsyncpa [#allocation9], 1 }
 0x434   :  { %1272 = vsyncpa [#allocation4], 1 }

</bundles_post_ra>
